<compile_context>
chip_gen: v7x
topology: tpu7x:2x2x1
jax: 0.10.0
libtpu: 0.0.40
codegen_flags: <defaults>
</compile_context>

<pallas_src>
import jax
import jax.numpy as jnp
from jax.experimental import pallas as pl
from jax.experimental.pallas import tpu as pltpu


def _round_up(x, m):
    return ((x + m - 1) // m) * m


def janet_cell_kernel(ci_ref, w_ref, b_ref, out_ref):
    """Fused JANET cell update for one batch tile.

    ci_ref : (TB, K_pad)       packed activations [h | x]; columns [0:H_pad)
                               hold the previous hidden state (zero padded),
                               columns [H_pad:H_pad+I) hold the input.
    w_ref  : (K_pad, 2*H_pad)  packed weights [[W_h2f | W_h2c]; [W_x2f | W_x2c]].
    b_ref  : (1, 2*H_pad)      packed f32 biases [b_f | b_c].
    out_ref: (TB, H_pad)       new hidden state.
    """
    # One MXU matmul for both gates, f32 accumulation.
    pre = jnp.dot(ci_ref[...], w_ref[...], preferred_element_type=jnp.float32)
    pre = pre + b_ref[...]

    hp = out_ref.shape[-1]                    # H_pad (multiple of 128 -> aligned slices)
    f = jax.nn.sigmoid(pre[:, :hp])           # forget gate
    cp = jnp.tanh(pre[:, hp:])                # candidate

    # h_prev is already resident in the packed activation tile -- no extra stream.
    h_prev = ci_ref[:, :hp].astype(jnp.float32)
    # c = f*h + (1-f)*cp  ==  cp + f*(h - cp)
    out_ref[...] = (cp + f * (h_prev - cp)).astype(out_ref.dtype)


def pack_janet_params(W_x2f, W_h2f, b_f, W_x2c, W_h2c, b_c, *,
                      compute_dtype=jnp.float32):
    """Pack JANET parameters ONCE into the fused TPU layout.

    Returns:
      W_packed: (K_pad, 2*H_pad) -- rows [0:H) are hidden->gate weights, rows
                [H_pad:H_pad+I) are input->gate weights (matches the [h | x]
                packed activation); columns [0:H_pad) -> forget, rest -> cand.
      b_packed: (1, 2*H_pad) f32   -- [b_f | b_c], zero padded.
    """
    I, H = W_x2f.shape
    H_pad = _round_up(H, 128)
    K_pad = _round_up(H_pad + I, 128)

    W_packed = jnp.zeros((K_pad, 2 * H_pad), compute_dtype)
    W_packed = W_packed.at[:H, :H].set(W_h2f.astype(compute_dtype))
    W_packed = W_packed.at[:H, H_pad:H_pad + H].set(W_h2c.astype(compute_dtype))
    W_packed = W_packed.at[H_pad:H_pad + I, :H].set(W_x2f.astype(compute_dtype))
    W_packed = W_packed.at[H_pad:H_pad + I, H_pad:H_pad + H].set(
        W_x2c.astype(compute_dtype))

    b_packed = jnp.zeros((1, 2 * H_pad), jnp.float32)
    b_packed = b_packed.at[0, :H].set(b_f.astype(jnp.float32))
    b_packed = b_packed.at[0, H_pad:H_pad + H].set(b_c.astype(jnp.float32))
    return W_packed, b_packed


def _janet_pallas_call(B_pad, TB, K_pad, H_pad, compute_dtype, single_buffer_resident):
    """Builds the pallas_call for one cell step."""
    resident_kwargs = {}
    if single_buffer_resident:
        # Constant index_map -> block never changes; one buffer is enough.
        resident_kwargs["pipeline_mode"] = pl.Buffered(1)

    itemsize = jnp.dtype(compute_dtype).itemsize
    w_bufs = 1 if single_buffer_resident else 2
    vmem_bytes = (
        2 * TB * K_pad * itemsize                 # packed activations (double buffered)
        + w_bufs * K_pad * 2 * H_pad * itemsize   # resident packed weight
        + w_bufs * 2 * H_pad * 4                  # resident packed bias (f32)
        + 2 * TB * H_pad * itemsize               # output (double buffered)
        + TB * 2 * H_pad * 4                      # f32 `pre` intermediate
        + 3 * TB * H_pad * 4                      # f / cp / blend temporaries
    )
    vmem_limit = int(min(100 * 1024 * 1024, max(2 * vmem_bytes, 16 * 1024 * 1024)))

    return pl.pallas_call(
        janet_cell_kernel,
        out_shape=jax.ShapeDtypeStruct((B_pad, H_pad), compute_dtype),
        grid_spec=pltpu.PrefetchScalarGridSpec(
            num_scalar_prefetch=0,
            grid=(B_pad // TB,),
            in_specs=[
                pl.BlockSpec((TB, K_pad), lambda i: (i, 0)),                     # [h|x] tile
                pl.BlockSpec((K_pad, 2 * H_pad), lambda i: (0, 0),
                             **resident_kwargs),                                 # weights
                pl.BlockSpec((1, 2 * H_pad), lambda i: (0, 0),
                             **resident_kwargs),                                 # bias
            ],
            out_specs=pl.BlockSpec((TB, H_pad), lambda i: (i, 0)),
        ),
        compiler_params=pltpu.CompilerParams(
            dimension_semantics=("parallel",),   # TODO(synk): CORE_PARALLEL on v7x
            vmem_limit_bytes=vmem_limit,
        ),
    )


def janet_cell_packed(x, h, W_packed, b_packed):
    """JANET cell step with pre-packed parameters. Returns new hidden (B, H)."""
    B, I = x.shape
    H = h.shape[1]
    K_pad, two_H_pad = W_packed.shape
    H_pad = two_H_pad // 2
    compute_dtype = W_packed.dtype

    # Sublane multiple depends on packing: 8 rows (f32), 16 (bf16), 32 (int8/fp8).
    sub = max(8, 32 // jnp.dtype(compute_dtype).itemsize)
    TB = min(256, _round_up(B, sub))
    B_pad = _round_up(B, TB)

    # Packed activation [h | x]: h in lane-aligned columns [0:H_pad), x after it.
    ci_pad = jnp.zeros((B_pad, K_pad), compute_dtype)
    ci_pad = ci_pad.at[:B, :H].set(h.astype(compute_dtype))
    ci_pad = ci_pad.at[:B, H_pad:H_pad + I].set(x.astype(compute_dtype))

    try:
        out_pad = _janet_pallas_call(
            B_pad, TB, K_pad, H_pad, compute_dtype, True)(ci_pad, W_packed, b_packed)
    except Exception:
        # This jax/Mosaic version rejected pl.Buffered(1); fall back to the
        # default double-buffered resident weight.
        out_pad = _janet_pallas_call(
            B_pad, TB, K_pad, H_pad, compute_dtype, False)(ci_pad, W_packed, b_packed)

    return out_pad[:B, :H]


def janet_cell(x, h, W_x2f, W_h2f, b_f, W_x2c, W_h2c, b_c, *, compute_dtype=None):
    """Convenience single-shot API (packs parameters internally).

    For sequences, call pack_janet_params() once and use janet_cell_packed().
    """
    if compute_dtype is None:
        compute_dtype = jnp.result_type(x.dtype, h.dtype)
    W_packed, b_packed = pack_janet_params(
        W_x2f, W_h2f, b_f, W_x2c, W_h2c, b_c, compute_dtype=compute_dtype)
    return janet_cell_packed(x, h, W_packed, b_packed)


# ---------------- pure-JAX reference & deterministic init ----------------

def janet_cell_reference(x, h, W_x2f, W_h2f, b_f, W_x2c, W_h2c, b_c):
    """Pure-JAX reference matching the PyTorch forward."""
    ci = jnp.concatenate([x, h], axis=1)
    W_f = jnp.concatenate([W_x2f, W_h2f], axis=0)
    W_c = jnp.concatenate([W_x2c, W_h2c], axis=0)
    f = jax.nn.sigmoid(ci @ W_f + b_f)
    cp = jnp.tanh(ci @ W_c + b_c)
    return f * h + (1.0 - f) * cp


def xavier_normal(key, shape):
    fan_in, fan_out = shape
    std = (2.0 / (fan_in + fan_out)) ** 0.5
    return std * jax.random.normal(key, shape, dtype=jnp.float32)


def orthogonal(key, n):
    a = jax.random.normal(key, (n, n), dtype=jnp.float32)
    q, r = jnp.linalg.qr(a)
    q = q * jnp.sign(jnp.diag(r))[None, :]
    return q


if __name__ == "__main__":
    key = jax.random.PRNGKey(0)
    k_x, k_h, k_wxf, k_whf, k_wxc, k_whc = jax.random.split(key, 6)

    batch_size = 8
    input_size = 16
    hidden_size = 32
    seq_len = 3

    xs = jax.random.normal(k_x, (seq_len, batch_size, input_size), dtype=jnp.float32)
    h0 = jax.random.normal(k_h, (batch_size, hidden_size), dtype=jnp.float32)

    # Parameters (deterministic, mirrors _reset_parameters).
    W_x2f = xavier_normal(k_wxf, (input_size, hidden_size))
    W_x2c = xavier_normal(k_wxc, (input_size, hidden_size))
    W_h2f = orthogonal(k_whf, hidden_size)
    W_h2c = orthogonal(k_whc, hidden_size)
    b_f = jnp.ones((hidden_size,), dtype=jnp.float32)    # constant_(b_f, 1)
    b_c = jnp.zeros((hidden_size,), dtype=jnp.float32)   # constant_(b_c, 0)

    # ---- f32 path: pack ONCE, reuse the packed weights across timesteps ----
    Wp, bp = pack_janet_params(W_x2f, W_h2f, b_f, W_x2c, W_h2c, b_c,
                               compute_dtype=jnp.float32)
    h_kernel = h0
    h_ref = h0
    for t in range(seq_len):
        h_kernel = janet_cell_packed(xs[t], h_kernel, Wp, bp)
        h_ref = janet_cell_reference(xs[t], h_ref, W_x2f, W_h2f, b_f,
                                     W_x2c, W_h2c, b_c)
    h_kernel = jax.block_until_ready(h_kernel)
    assert h_kernel.shape == (batch_size, hidden_size)
    err_f32 = float(jnp.max(jnp.abs(h_kernel - h_ref)))
    assert err_f32 < 1e-4, err_f32

    # ---- bf16 compute path (half the weight HBM traffic, full-rate MXU) ----
    Wp16, bp16 = pack_janet_params(W_x2f, W_h2f, b_f, W_x2c, W_h2c, b_c,
                                   compute_dtype=jnp.bfloat16)
    h_bf16 = janet_cell_packed(xs[0], h0, Wp16, bp16)
    h_bf16 = jax.block_until_ready(h_bf16)
    h_ref1 = janet_cell_reference(xs[0], h0, W_x2f, W_h2f, b_f, W_x2c, W_h2c, b_c)
    err_bf16 = float(jnp.max(jnp.abs(h_bf16.astype(jnp.float32) - h_ref1)))
    assert err_bf16 < 0.25, err_bf16

    print("KERNEL_OK")
</pallas_src>

<mosaic_0001>
module attributes {stable_mosaic.version = 11 : i64} {
  func.func @janet_cell_kernel(%arg0: i32, %arg1: memref<8x256xf32, #tpu.memory_space<vmem>>, %arg2: memref<256x256xf32, #tpu.memory_space<vmem>>, %arg3: memref<1x256xf32, #tpu.memory_space<vmem>>, %arg4: memref<8x128xf32, #tpu.memory_space<vmem>>) attributes {dimension_semantics = [#tpu.dimension_semantics<parallel>], iteration_bounds = array<i64: 1>, scalar_prefetch = 0 : i64, scratch_operands = 0 : i64, tpu.core_type = #tpu.core_type<tc>, window_params = [{transform_indices = @transform_0, window_bounds = array<i64: 8, 256>}, {pipeline_mode = #tpu.pipeline_mode<synchronous>, transform_indices = @transform_1, window_bounds = array<i64: 256, 256>}, {pipeline_mode = #tpu.pipeline_mode<synchronous>, transform_indices = @transform_2, window_bounds = array<i64: 1, 256>}, {transform_indices = @transform_3, window_bounds = array<i64: 8, 128>}]} {
    %c0 = arith.constant 0 : index
    %c0_0 = arith.constant 0 : index
    %0 = vector.load %arg1[%c0, %c0_0] : memref<8x256xf32, #tpu.memory_space<vmem>>, vector<8x256xf32>
    %c0_1 = arith.constant 0 : index
    %c0_2 = arith.constant 0 : index
    %1 = vector.load %arg2[%c0_1, %c0_2] : memref<256x256xf32, #tpu.memory_space<vmem>>, vector<256x256xf32>
    %cst = arith.constant dense<0.000000e+00> : vector<8x256xf32>
    %2 = tpu.matmul %0, %1, %cst {dimension_numbers = #tpu.dot_dimension_numbers<[1], [0], [0], [1], [0, 0, 1, 1], [], []>} : vector<8x256xf32>, vector<256x256xf32>, vector<8x256xf32> -> vector<8x256xf32>
    %c0_3 = arith.constant 0 : index
    %c0_4 = arith.constant 0 : index
    %3 = vector.load %arg3[%c0_3, %c0_4] : memref<1x256xf32, #tpu.memory_space<vmem>>, vector<1x256xf32>
    %4 = vector.broadcast %3 : vector<1x256xf32> to vector<8x256xf32>
    %5 = arith.addf %2, %4 : vector<8x256xf32>
    %6 = vector.extract_strided_slice %5 {offsets = [0, 0], sizes = [8, 128], strides = [1, 1]} : vector<8x256xf32> to vector<8x128xf32>
    %7 = arith.negf %6 : vector<8x128xf32>
    %8 = math.exp %7 : vector<8x128xf32>
    %cst_5 = arith.constant 1.000000e+00 : f32
    %9 = vector.broadcast %cst_5 : f32 to vector<8x128xf32>
    %10 = arith.addf %9, %8 : vector<8x128xf32>
    %11 = arith.divf %9, %10 : vector<8x128xf32>
    %12 = vector.extract_strided_slice %5 {offsets = [0, 128], sizes = [8, 128], strides = [1, 1]} : vector<8x256xf32> to vector<8x128xf32>
    %13 = math.tanh %12 : vector<8x128xf32>
    %c0_6 = arith.constant 0 : index
    %c0_7 = arith.constant 0 : index
    %14 = vector.load %arg1[%c0_6, %c0_7] : memref<8x256xf32, #tpu.memory_space<vmem>>, vector<8x128xf32>
    %15 = arith.subf %14, %13 : vector<8x128xf32>
    %16 = arith.mulf %11, %15 : vector<8x128xf32>
    %17 = arith.addf %13, %16 : vector<8x128xf32>
    %c0_8 = arith.constant 0 : index
    %c0_9 = arith.constant 0 : index
    %18 = vector.load %arg4[%c0_8, %c0_9] : memref<8x128xf32, #tpu.memory_space<vmem>>, vector<8x128xf32>
    tpu.vector_store %arg4[%c0_8, %c0_9], %17 {strides = array<i32>} : memref<8x128xf32, #tpu.memory_space<vmem>>, vector<8x128xf32>,
    return
  }
  func.func @transform_0(%arg0: i32) -> (i32, i32) {
    %c0_i32 = arith.constant 0 : i32
    %c0_i32_0 = arith.constant 0 : i32
    return %arg0, %c0_i32 : i32, i32
  }
  func.func @transform_1(%arg0: i32) -> (i32, i32) {
    %c0_i32 = arith.constant 0 : i32
    %c0_i32_0 = arith.constant 0 : i32
    %c0_i32_1 = arith.constant 0 : i32
    return %c0_i32, %c0_i32_0 : i32, i32
  }
  func.func @transform_2(%arg0: i32) -> (i32, i32) {
    %c0_i32 = arith.constant 0 : i32
    %c0_i32_0 = arith.constant 0 : i32
    %c0_i32_1 = arith.constant 0 : i32
    return %c0_i32, %c0_i32_0 : i32, i32
  }
  func.func @transform_3(%arg0: i32) -> (i32, i32) {
    %c0_i32 = arith.constant 0 : i32
    %c0_i32_0 = arith.constant 0 : i32
    return %arg0, %c0_i32 : i32, i32
  }
}

module attributes {stable_mosaic.version = 11 : i64} {
  func.func @janet_cell_kernel(%arg0: i32, %arg1: memref<8x256xf32, #tpu.memory_space<vmem>>, %arg2: memref<256x256xf32, #tpu.memory_space<vmem>>, %arg3: memref<1x256xf32, #tpu.memory_space<vmem>>, %arg4: memref<8x128xf32, #tpu.memory_space<vmem>>) attributes {dimension_semantics = [#tpu.dimension_semantics<parallel>], iteration_bounds = array<i64: 1>, scalar_prefetch = 0 : i64, scratch_operands = 0 : i64, tpu.core_type = #tpu.core_type<tc>, window_params = [{transform_indices = @transform_0, window_bounds = array<i64: 8, 256>}, {pipeline_mode = #tpu.pipeline_mode<synchronous>, transform_indices = @transform_1, window_bounds = array<i64: 256, 256>}, {pipeline_mode = #tpu.pipeline_mode<synchronous>, transform_indices = @transform_2, window_bounds = array<i64: 1, 256>}, {transform_indices = @transform_3, window_bounds = array<i64: 8, 128>}]} {
    %c0 = arith.constant 0 : index
    %c0_0 = arith.constant 0 : index
    %0 = vector.load %arg1[%c0, %c0_0] : memref<8x256xf32, #tpu.memory_space<vmem>>, vector<8x256xf32>
    %c0_1 = arith.constant 0 : index
    %c0_2 = arith.constant 0 : index
    %1 = vector.load %arg2[%c0_1, %c0_2] : memref<256x256xf32, #tpu.memory_space<vmem>>, vector<256x256xf32>
    %cst = arith.constant dense<0.000000e+00> : vector<8x256xf32>
    %2 = tpu.matmul %0, %1, %cst {dimension_numbers = #tpu.dot_dimension_numbers<[1], [0], [0], [1], [0, 0, 1, 1], [], []>} : vector<8x256xf32>, vector<256x256xf32>, vector<8x256xf32> -> vector<8x256xf32>
    %c0_3 = arith.constant 0 : index
    %c0_4 = arith.constant 0 : index
    %3 = vector.load %arg3[%c0_3, %c0_4] : memref<1x256xf32, #tpu.memory_space<vmem>>, vector<1x256xf32>
    %4 = vector.broadcast %3 : vector<1x256xf32> to vector<8x256xf32>
    %5 = arith.addf %2, %4 : vector<8x256xf32>
    %6 = vector.extract_strided_slice %5 {offsets = [0, 0], sizes = [8, 128], strides = [1, 1]} : vector<8x256xf32> to vector<8x128xf32>
    %7 = arith.negf %6 : vector<8x128xf32>
    %8 = math.exp %7 : vector<8x128xf32>
    %cst_5 = arith.constant 1.000000e+00 : f32
    %9 = vector.broadcast %cst_5 : f32 to vector<8x128xf32>
    %10 = arith.addf %9, %8 : vector<8x128xf32>
    %11 = arith.divf %9, %10 : vector<8x128xf32>
    %12 = vector.extract_strided_slice %5 {offsets = [0, 128], sizes = [8, 128], strides = [1, 1]} : vector<8x256xf32> to vector<8x128xf32>
    %13 = math.tanh %12 : vector<8x128xf32>
    %c0_6 = arith.constant 0 : index
    %c0_7 = arith.constant 0 : index
    %14 = vector.load %arg1[%c0_6, %c0_7] : memref<8x256xf32, #tpu.memory_space<vmem>>, vector<8x128xf32>
    %15 = arith.subf %14, %13 : vector<8x128xf32>
    %16 = arith.mulf %11, %15 : vector<8x128xf32>
    %17 = arith.addf %13, %16 : vector<8x128xf32>
    %c0_8 = arith.constant 0 : index
    %c0_9 = arith.constant 0 : index
    %18 = vector.load %arg4[%c0_8, %c0_9] : memref<8x128xf32, #tpu.memory_space<vmem>>, vector<8x128xf32>
    tpu.vector_store %arg4[%c0_8, %c0_9], %17 {strides = array<i32>} : memref<8x128xf32, #tpu.memory_space<vmem>>, vector<8x128xf32>,
    return
  }
  func.func @transform_0(%arg0: i32) -> (i32, i32) {
    %c0_i32 = arith.constant 0 : i32
    %c0_i32_0 = arith.constant 0 : i32
    return %arg0, %c0_i32 : i32, i32
  }
  func.func @transform_1(%arg0: i32) -> (i32, i32) {
    %c0_i32 = arith.constant 0 : i32
    %c0_i32_0 = arith.constant 0 : i32
    %c0_i32_1 = arith.constant 0 : i32
    return %c0_i32, %c0_i32_0 : i32, i32
  }
  func.func @transform_2(%arg0: i32) -> (i32, i32) {
    %c0_i32 = arith.constant 0 : i32
    %c0_i32_0 = arith.constant 0 : i32
    %c0_i32_1 = arith.constant 0 : i32
    return %c0_i32, %c0_i32_0 : i32, i32
  }
  func.func @transform_3(%arg0: i32) -> (i32, i32) {
    %c0_i32 = arith.constant 0 : i32
    %c0_i32_0 = arith.constant 0 : i32
    return %arg0, %c0_i32 : i32, i32
  }
}

</mosaic_0001>

<bundles_post_ra>
// kernel: tpu_custom_call.1
= control target key start
LH: loop header
LB: loop body
LE: loop exit
PB: predicated region body
PF: predicated region fallthrough
CT: control target
= control target key end

     0   :  { %8 = vsyncpa [#allocation3], 0  ;;  %s437_s0 = inlined_call_operand.hbm [shape: f32[8,256], index: 0, kind: input, shape index: {}]   ;;  %s438_s1 = inlined_call_operand.hbm [shape: f32[256,256], index: 1, kind: input, shape index: {}]   ;;  %s439_s2 = inlined_call_operand.vmem [shape: f32[1,256], index: 2, kind: input, shape index: {}]   ;;  %s440_s3 = inlined_call_operand.hbm [shape: f32[8,128], index: 3, kind: output, shape index: {}]  }
   0x1   :  { %9 = vsyncpa [#allocation6], 0 }
   0x2   :  { %10 = vsyncpa [#allocation4], 0  ;;  %s366_s12 = smov [#allocation2]   ;;  %s367_s14 = smov [#allocation5]  }
   0x3   :  { %s17_s13 = sshll.u32 %s366_s12, 4  ;;  %s26_s15 = sshll.u32 %s367_s14, 4  ;;  %s18_s13 = int_to_ptr.vmem [resolvable:$true] %s17_s13  ;;  %s391_s15 = int_to_ptr.vmem [resolvable:$true] %s26_s15 }
   0x4   :  { %s294_s18 = scalar_lea.hbm %s437_s0, 256 }
   0x5   :  { %p295_p0 = scmp.ne.s32.totalorder %s437_s0, %s294_s18  ;;  %p298_p1 = scmp.lt.u32.totalorder %s294_s18, %s437_s0 }
   0x7   :  { %p300_p2 = pnand %p298_p1, %p295_p0 }
   0x9   :  { %303 = shalt.err (!%p300_p2)
}
   0xa   :  { %s304_s23 = scalar_lea.vmem %s18_s13, 256  ;;  %p309_p4 = scmp.lt.s32.totalorder %s18_s13, %s18_s13 }
   0xb   :  { %p305_p3 = scmp.ne.s32.totalorder %s18_s13, %s304_s23  ;;  %p310_p5 = scmp.lt.s32.totalorder %s304_s23, %s304_s23 }
   0xd   :  { %p311_p6 = por %p310_p5, %p309_p4 }
   0xf   :  { %p312_p7 = pnand %p311_p6, %p305_p3 }
  0x11   :  { %315 = shalt.err (!%p312_p7)
}
  0x12   :  { %20 = dma.hbm_to_vmem [thread:$0]  %s437_s0, 256, %s18_s13, [#allocation3]  }
  0x13   :  { %s316_s28 = scalar_lea.hbm %s438_s1, 8192 }
  0x14   :  { %p317_p8 = scmp.ne.s32.totalorder %s438_s1, %s316_s28  ;;  %p320_p9 = scmp.lt.u32.totalorder %s316_s28, %s438_s1 }
  0x16   :  { %p322_p10 = pnand %p320_p9, %p317_p8 }
  0x18   :  { %325 = shalt.err (!%p322_p10)
}
  0x19   :  { %s326_s6 = scalar_lea.vmem %s391_s15, 8192  ;;  %p331_p12 = scmp.lt.s32.totalorder %s391_s15, %s391_s15 }
  0x1a   :  { %p327_p11 = scmp.ne.s32.totalorder %s391_s15, %s326_s6  ;;  %p332_p13 = scmp.lt.s32.totalorder %s326_s6, %s326_s6 }
  0x1c   :  { %p333_p0 = por %p332_p13, %p331_p12 }
  0x1e   :  { %p334_p1 = pnand %p333_p0, %p327_p11 }
  0x20   :  { %337 = shalt.err (!%p334_p1)
}
  0x21   :  { %s368_s0 = smov 256   ;;  %s369_s7 = smov 16  }
  0x22   :  { %32 = dma.hbm_to_vmem [thread:$0]  %s438_s1, 8192, %s391_s15, [#allocation6], %s368_s0, %s368_s0, %s369_s7  }
  0x23   :  { %360 = dma.done.wait [#allocation3], 256  }
  0x24   :  { %361 = vsyncadd [#allocation3], 4294967040 }
  0x25   :  { %362 = dma.done.wait [#allocation6], 8192  }
  0x26   :  { %363 = vsyncadd [#allocation6], 4294959104  ;;  %v44_v0 = vld [vmem:[#allocation5 + $0x8] sm:$0xff]  ;;  %v46_v1 = vld [vmem:[#allocation5 + $0x18] sm:$0xff]  ;;  %s370_s11 = smov [#allocation7]  }
  0x27   :  { %v43_v2 = vld [vmem:[#allocation5] sm:$0xff]  ;;  %v219_v3 = vpack.c.bf16 %v46_v1, %v44_v0  ;;  %v45_v4 = vld [vmem:[#allocation5 + $0x10] sm:$0xff]  ;;  %v48_v5 = vld [vmem:[#allocation5 + $0x28] sm:$0xff]  ;;  %s208_s12 = sshll.u32 %s370_s11, 4  ;;  %s209_s12 = int_to_ptr.vmem [resolvable:$true] %s208_s12 }
  0x28   :  { %v50_v6 = vld [vmem:[#allocation5 + $0x38] sm:$0xff]  ;;  %v221_v7 = vpack.c.bf16 %v45_v4, %v43_v2  ;;  %v47_v9 = vld [vmem:[#allocation5 + $0x20] sm:$0xff]  ;;  %v49_v10 = vld [vmem:[#allocation5 + $0x30] sm:$0xff]  ;;  %p343_p3 = scmp.lt.s32.totalorder %s209_s12, %s209_s12 }
  0x29   :  { %v223_v8 = vpack.c.bf16 %v50_v6, %v48_v5  ;;  %v52_v11 = vld [vmem:[#allocation5 + $0x48] sm:$0xff]  ;;  %220 = vmatprep.subr.bf16.mxu0 %v219_v3  ;;  %v54_v12 = vld [vmem:[#allocation5 + $0x58] sm:$0xff]  ;;  %v225_v13 = vpack.c.bf16 %v49_v10, %v47_v9  ;;  %v51_v15 = vld [vmem:[#allocation5 + $0x40] sm:$0xff] }
  0x2a   :  { %222 = vmatpush1.bf16.msra.mxu0 %v221_v7  ;;  %v227_v14 = vpack.c.bf16 %v54_v12, %v52_v11  ;;  %v53_v16 = vld [vmem:[#allocation5 + $0x50] sm:$0xff]  ;;  %v56_v17 = vld [vmem:[#allocation5 + $0x68] sm:$0xff]  ;;  %v58_v18 = vld [vmem:[#allocation5 + $0x78] sm:$0xff] }
  0x2b   :  { %224 = vmatprep.subr.bf16.mxu0 %v223_v8  ;;  %v229_v19 = vpack.c.bf16 %v53_v16, %v51_v15  ;;  %v231_v20 = vpack.c.bf16 %v58_v18, %v56_v17  ;;  %v55_v21 = vld [vmem:[#allocation5 + $0x60] sm:$0xff]  ;;  %v57_v22 = vld [vmem:[#allocation5 + $0x70] sm:$0xff]  ;;  %v60_v23 = vld [vmem:[#allocation5 + $0x88] sm:$0xff] }
  0x2c   :  { %v62_v24 = vld [vmem:[#allocation5 + $0x98] sm:$0xff]  ;;  %v233_v25 = vpack.c.bf16 %v57_v22, %v55_v21  ;;  %v59_v27 = vld [vmem:[#allocation5 + $0x80] sm:$0xff]  ;;  %v61_v28 = vld [vmem:[#allocation5 + $0x90] sm:$0xff] }
  0x2d   :  { %v235_v26 = vpack.c.bf16 %v62_v24, %v60_v23  ;;  %v64_v29 = vld [vmem:[#allocation5 + $0xa8] sm:$0xff]  ;;  %v66_v30 = vld [vmem:[#allocation5 + $0xb8] sm:$0xff]  ;;  %v237_v31 = vpack.c.bf16 %v61_v28, %v59_v27  ;;  %v63_v33 = vld [vmem:[#allocation5 + $0xa0] sm:$0xff] }
  0x2e   :  { %226 = vmatpush1.bf16.msra.mxu0 %v225_v13  ;;  %v239_v32 = vpack.c.bf16 %v66_v30, %v64_v29  ;;  %v65_v34 = vld [vmem:[#allocation5 + $0xb0] sm:$0xff]  ;;  %v68_v35 = vld [vmem:[#allocation5 + $0xc8] sm:$0xff]  ;;  %v70_v36 = vld [vmem:[#allocation5 + $0xd8] sm:$0xff] }
  0x2f   :  { %228 = vmatprep.subr.bf16.mxu0 %v227_v14  ;;  %v241_v37 = vpack.c.bf16 %v65_v34, %v63_v33  ;;  %v243_v38 = vpack.c.bf16 %v70_v36, %v68_v35  ;;  %v67_v39 = vld [vmem:[#allocation5 + $0xc0] sm:$0xff]  ;;  %v69_v40 = vld [vmem:[#allocation5 + $0xd0] sm:$0xff]  ;;  %v42_v41 = vld [vmem:[#allocation2 + $0x8] sm:$0xff]  ;;  %v109_v34 = vlaneseq }
  0x30   :  { %v72_v42 = vld [vmem:[#allocation5 + $0xe8] sm:$0xff]  ;;  %v74_v43 = vld [vmem:[#allocation5 + $0xf8] sm:$0xff]  ;;  %183 = vmatprep.mubr.f32.mxu0 %v42_v41  ;;  %v245_v44 = vpack.c.bf16 %v69_v40, %v67_v39  ;;  %v71_v46 = vld [vmem:[#allocation5 + $0xe0] sm:$0xff] }
  0x31   :  { %v247_v45 = vpack.c.bf16 %v74_v43, %v72_v42  ;;  %v73_v47 = vld [vmem:[#allocation5 + $0xf0] sm:$0xff]  ;;  %v76_v48 = vld [vmem:[#allocation5 + $0x108] sm:$0xff]  ;;  %v78_v49 = vld [vmem:[#allocation5 + $0x118] sm:$0xff]  ;;  %v110_v35 = vshrl.u32 %v109_v34, 7 }
  0x32   :  { %230 = vmatpush1.bf16.msra.mxu0 %v229_v19  ;;  %v249_v50 = vpack.c.bf16 %v73_v47, %v71_v46  ;;  %v251_v51 = vpack.c.bf16 %v78_v49, %v76_v48  ;;  %v75_v52 = vld [vmem:[#allocation5 + $0x100] sm:$0xff]  ;;  %v77_v53 = vld [vmem:[#allocation5 + $0x110] sm:$0xff]  ;;  %v80_v54 = vld [vmem:[#allocation5 + $0x128] sm:$0xff] }
  0x33   :  { %232 = vmatprep.subr.bf16.mxu0 %v231_v20  ;;  %v82_v55 = vld [vmem:[#allocation5 + $0x138] sm:$0xff]  ;;  %v253_v56 = vpack.c.bf16 %v77_v53, %v75_v52  ;;  %v79_v58 = vld [vmem:[#allocation5 + $0x120] sm:$0xff]  ;;  %v81_v59 = vld [vmem:[#allocation5 + $0x130] sm:$0xff]  ;;  %v111_v36 = vsub.s32 0, %v110_v35  ;;  %v115_v42 = vsub.s32 1, %v110_v35 }
  0x34   :  { %v255_v57 = vpack.c.bf16 %v82_v55, %v80_v54  ;;  %v84_v60 = vld [vmem:[#allocation5 + $0x148] sm:$0xff]  ;;  %v86_v61 = vld [vmem:[#allocation5 + $0x158] sm:$0xff]  ;;  %v257_v62 = vpack.c.bf16 %v81_v59, %v79_v58  ;;  %v83_v0 = vld [vmem:[#allocation5 + $0x140] sm:$0xff] }
  0x35   :  { %v259_v63 = vpack.c.bf16 %v86_v61, %v84_v60  ;;  %v85_v1 = vld [vmem:[#allocation5 + $0x150] sm:$0xff]  ;;  %v88_v2 = vld [vmem:[#allocation5 + $0x168] sm:$0xff]  ;;  %v90_v3 = vld [vmem:[#allocation5 + $0x178] sm:$0xff] }
  0x36   :  { %234 = vmatpush1.bf16.msra.mxu0 %v233_v25  ;;  %v261_v4 = vpack.c.bf16 %v85_v1, %v83_v0  ;;  %v263_v5 = vpack.c.bf16 %v90_v3, %v88_v2  ;;  %v87_v6 = vld [vmem:[#allocation5 + $0x160] sm:$0xff]  ;;  %v89_v7 = vld [vmem:[#allocation5 + $0x170] sm:$0xff]  ;;  %v92_v8 = vld [vmem:[#allocation5 + $0x188] sm:$0xff] }
  0x37   :  { %236 = vmatprep.subr.bf16.mxu0 %v235_v26  ;;  %v94_v9 = vld [vmem:[#allocation5 + $0x198] sm:$0xff]  ;;  %v265_v10 = vpack.c.bf16 %v89_v7, %v87_v6  ;;  %v91_v12 = vld [vmem:[#allocation5 + $0x180] sm:$0xff]  ;;  %v93_v13 = vld [vmem:[#allocation5 + $0x190] sm:$0xff] }
  0x38   :  { %v267_v11 = vpack.c.bf16 %v94_v9, %v92_v8  ;;  %v96_v14 = vld [vmem:[#allocation5 + $0x1a8] sm:$0xff]  ;;  %v98_v15 = vld [vmem:[#allocation5 + $0x1b8] sm:$0xff]  ;;  %v269_v16 = vpack.c.bf16 %v93_v13, %v91_v12  ;;  %v95_v18 = vld [vmem:[#allocation5 + $0x1a0] sm:$0xff] }
  0x39   :  { %v271_v17 = vpack.c.bf16 %v98_v15, %v96_v14  ;;  %v97_v19 = vld [vmem:[#allocation5 + $0x1b0] sm:$0xff]  ;;  %v100_v20 = vld [vmem:[#allocation5 + $0x1c8] sm:$0xff]  ;;  %v102_v21 = vld [vmem:[#allocation5 + $0x1d8] sm:$0xff] }
  0x3a   :  { %238 = vmatpush1.bf16.msra.mxu0 %v237_v31  ;;  %v273_v22 = vpack.c.bf16 %v97_v19, %v95_v18  ;;  %v275_v23 = vpack.c.bf16 %v102_v21, %v100_v20  ;;  %v99_v24 = vld [vmem:[#allocation5 + $0x1c0] sm:$0xff]  ;;  %v101_v25 = vld [vmem:[#allocation5 + $0x1d0] sm:$0xff]  ;;  %v104_v26 = vld [vmem:[#allocation5 + $0x1e8] sm:$0xff] }
  0x3b   :  { %240 = vmatprep.subr.bf16.mxu0 %v239_v32  ;;  %v106_v27 = vld [vmem:[#allocation5 + $0x1f8] sm:$0xff]  ;;  %v277_v28 = vpack.c.bf16 %v101_v25, %v99_v24  ;;  %v103_v30 = vld [vmem:[#allocation5 + $0x1e0] sm:$0xff]  ;;  %v105_v31 = vld [vmem:[#allocation5 + $0x1f0] sm:$0xff] }
  0x3c   :  { %v279_v29 = vpack.c.bf16 %v106_v27, %v104_v26  ;;  %v281_v32 = vpack.c.bf16 %v105_v31, %v103_v30  ;;  %v41_v33 = vld [vmem:[#allocation2] sm:$0xff] }
  0x3e   :  { %242 = vmatpush1.bf16.msra.mxu0 %v241_v37  ;;  %v107_v37 = vld [vmem:[%s439_s2] sm:$0x3]  ;;  %s338_s2 = scalar_lea.vmem %s209_s12, 128 }
  0x3f   :  { %244 = vmatprep.subr.bf16.mxu0 %v243_v38  ;;  %v112_v38 = vrot.slane %v107_v37, %v111_v36  ;;  %p339_p2 = scmp.ne.s32.totalorder %s209_s12, %s338_s2  ;;  %p344_p4 = scmp.lt.s32.totalorder %s338_s2, %s338_s2 }
  0x41   :  { %p345_p5 = por %p344_p4, %p343_p3 }
  0x42   :  { %246 = vmatpush1.bf16.msra.mxu0 %v245_v44  ;;  %v116_v44 = vrot.slane %v107_v37, %v115_v42 }
  0x43   :  { %248 = vmatprep.subr.bf16.mxu0 %v247_v45  ;;  %p346_p6 = pnand %p345_p5, %p339_p2 }
  0x46   :  { %250 = vmatpush1.bf16.msra.mxu0 %v249_v50 }
  0x47   :  { %252 = vmatprep.subr.bf16.mxu0 %v251_v51 }
  0x4a   :  { %254 = vmatpush1.bf16.msra.mxu0 %v253_v56 }
  0x4b   :  { %256 = vmatprep.subr.bf16.mxu0 %v255_v57 }
  0x4e   :  { %258 = vmatpush1.bf16.msra.mxu0 %v257_v62 }
  0x4f   :  { %260 = vmatprep.subr.bf16.mxu0 %v259_v63 }
  0x52   :  { %262 = vmatpush1.bf16.msra.mxu0 %v261_v4 }
  0x53   :  { %264 = vmatprep.subr.bf16.mxu0 %v263_v5 }
  0x56   :  { %266 = vmatpush1.bf16.msra.mxu0 %v265_v10 }
  0x57   :  { %268 = vmatprep.subr.bf16.mxu0 %v267_v11 }
  0x5a   :  { %270 = vmatpush1.bf16.msra.mxu0 %v269_v16 }
  0x5b   :  { %272 = vmatprep.subr.bf16.mxu0 %v271_v17 }
  0x5e   :  { %274 = vmatpush1.bf16.msra.mxu0 %v273_v22 }
  0x5f   :  { %276 = vmatprep.subr.bf16.mxu0 %v275_v23 }
  0x62   :  { %278 = vmatpush1.bf16.msra.mxu0 %v277_v28 }
  0x63   :  { %280 = vmatprep.subr.bf16.mxu0 %v279_v29 }
  0x66   :  { %282 = vmatpush1.bf16.msra.mxu0 %v281_v32 }
  0x69   :  { %184 = vmatmul.mubr.f32.vlgmr.msra.gmra.mrb[0].mxu0 %v41_v33 }
 0x13c   :  { %v185_v39 = vpop.f32.mrb[0].mxu0 }
 0x13d   :  { %v186_v40 = vadd.f32 %v185_v39, %v112_v38  ;;  %v187_v41 = vpop.f32.mrb[1].mxu0 }
 0x13e   :  { %v188_v45 = vadd.f32 %v187_v41, %v116_v44 }
 0x13f   :  { %v218_v43 = vmul.f32 -1.442695, %v186_v40 }
 0x141   :  { %288 = vpow2.f32 %v218_v43 }
 0x142   :  { %290 = vtanh.f32 %v188_v45 }
 0x14b   :  { %v289_v46 = vpop.eup %288 }
 0x14c   :  { %v193_v47 = vadd.f32 1.0, %v289_v46  ;;  %v291_v48 = vpop.eup %290 }
 0x14d   :  { %v198_v49 = vsub.f32 %v41_v33, %v291_v48 }
 0x14e   :  { %292 = vrcp.f32 %v193_v47 }
 0x158   :  { %v293_v50 = vpop.eup %292 }
 0x159   :  { %v199_v51 = vmul.f32 %v293_v50, %v198_v49 }
 0x15b   :  { %v200_v52 = vadd.f32 %v291_v48, %v199_v51 }
 0x15d   :  { %201 = vst [vmem:[#allocation7] sm:$0xff] %v200_v52 }
 0x15e   :  { %349 = shalt.err (!%p346_p6)
}
 0x15f   :  { %s350_s15 = scalar_lea.hbm %s440_s3, 128 }
 0x160   :  { %p351_p7 = scmp.ne.s32.totalorder %s440_s3, %s350_s15  ;;  %p354_p8 = scmp.lt.u32.totalorder %s350_s15, %s440_s3 }
 0x162   :  { %p356_p9 = pnand %p354_p8, %p351_p7 }
 0x164   :  { %359 = shalt.err (!%p356_p9)
}
 0x165   :  { %211 = dma.vmem_to_hbm [thread:$0]  %s209_s12, 128, %s440_s3, [#allocation4]  }
 0x166   :  { %364 = dma.done.wait [#allocation4], 128  }
 0x167   :  { %365 = vsyncadd [#allocation4], 4294967168 }
 0x168   :  { %215 = vsyncpa [#allocation3], 1 }
 0x169   :  { %216 = vsyncpa [#allocation6], 1 }
 0x16a   :  { %217 = vsyncpa [#allocation4], 1 }

// kernel: tpu_custom_call.1
= control target key start
LH: loop header
LB: loop body
LE: loop exit
PB: predicated region body
PF: predicated region fallthrough
CT: control target
= control target key end

     0   :  { %8 = vsyncpa [#allocation3], 0  ;;  %s437_s0 = inlined_call_operand.hbm [shape: f32[8,256], index: 0, kind: input, shape index: {}]   ;;  %s438_s1 = inlined_call_operand.hbm [shape: f32[256,256], index: 1, kind: input, shape index: {}]   ;;  %s439_s2 = inlined_call_operand.vmem [shape: f32[1,256], index: 2, kind: input, shape index: {}]   ;;  %s440_s3 = inlined_call_operand.hbm [shape: f32[8,128], index: 3, kind: output, shape index: {}]  }
   0x1   :  { %9 = vsyncpa [#allocation6], 0 }
   0x2   :  { %10 = vsyncpa [#allocation4], 0  ;;  %s366_s12 = smov [#allocation2]   ;;  %s367_s14 = smov [#allocation5]  }
   0x3   :  { %s17_s13 = sshll.u32 %s366_s12, 4  ;;  %s26_s15 = sshll.u32 %s367_s14, 4  ;;  %s18_s13 = int_to_ptr.vmem [resolvable:$true] %s17_s13  ;;  %s391_s15 = int_to_ptr.vmem [resolvable:$true] %s26_s15 }
   0x4   :  { %s294_s18 = scalar_lea.hbm %s437_s0, 256 }
   0x5   :  { %p295_p0 = scmp.ne.s32.totalorder %s437_s0, %s294_s18  ;;  %p298_p1 = scmp.lt.u32.totalorder %s294_s18, %s437_s0 }
   0x7   :  { %p300_p2 = pnand %p298_p1, %p295_p0 }
   0x9   :  { %303 = shalt.err (!%p300_p2)
}
   0xa   :  { %s304_s23 = scalar_lea.vmem %s18_s13, 256  ;;  %p309_p4 = scmp.lt.s32.totalorder %s18_s13, %s18_s13 }
   0xb   :  { %p305_p3 = scmp.ne.s32.totalorder %s18_s13, %s304_s23  ;;  %p310_p5 = scmp.lt.s32.totalorder %s304_s23, %s304_s23 }
   0xd   :  { %p311_p6 = por %p310_p5, %p309_p4 }
   0xf   :  { %p312_p7 = pnand %p311_p6, %p305_p3 }
  0x11   :  { %315 = shalt.err (!%p312_p7)
}
  0x12   :  { %20 = dma.hbm_to_vmem [thread:$0]  %s437_s0, 256, %s18_s13, [#allocation3]  }
  0x13   :  { %s316_s28 = scalar_lea.hbm %s438_s1, 8192 }
  0x14   :  { %p317_p8 = scmp.ne.s32.totalorder %s438_s1, %s316_s28  ;;  %p320_p9 = scmp.lt.u32.totalorder %s316_s28, %s438_s1 }
  0x16   :  { %p322_p10 = pnand %p320_p9, %p317_p8 }
  0x18   :  { %325 = shalt.err (!%p322_p10)
}
  0x19   :  { %s326_s6 = scalar_lea.vmem %s391_s15, 8192  ;;  %p331_p12 = scmp.lt.s32.totalorder %s391_s15, %s391_s15 }
  0x1a   :  { %p327_p11 = scmp.ne.s32.totalorder %s391_s15, %s326_s6  ;;  %p332_p13 = scmp.lt.s32.totalorder %s326_s6, %s326_s6 }
  0x1c   :  { %p333_p0 = por %p332_p13, %p331_p12 }
  0x1e   :  { %p334_p1 = pnand %p333_p0, %p327_p11 }
  0x20   :  { %337 = shalt.err (!%p334_p1)
}
  0x21   :  { %s368_s0 = smov 256   ;;  %s369_s7 = smov 16  }
  0x22   :  { %32 = dma.hbm_to_vmem [thread:$0]  %s438_s1, 8192, %s391_s15, [#allocation6], %s368_s0, %s368_s0, %s369_s7  }
  0x23   :  { %360 = dma.done.wait [#allocation3], 256  }
  0x24   :  { %361 = vsyncadd [#allocation3], 4294967040 }
  0x25   :  { %362 = dma.done.wait [#allocation6], 8192  }
  0x26   :  { %363 = vsyncadd [#allocation6], 4294959104  ;;  %v44_v0 = vld [vmem:[#allocation5 + $0x8] sm:$0xff]  ;;  %v46_v1 = vld [vmem:[#allocation5 + $0x18] sm:$0xff]  ;;  %s370_s11 = smov [#allocation7]  }
  0x27   :  { %v43_v2 = vld [vmem:[#allocation5] sm:$0xff]  ;;  %v219_v3 = vpack.c.bf16 %v46_v1, %v44_v0  ;;  %v45_v4 = vld [vmem:[#allocation5 + $0x10] sm:$0xff]  ;;  %v48_v5 = vld [vmem:[#allocation5 + $0x28] sm:$0xff]  ;;  %s208_s12 = sshll.u32 %s370_s11, 4  ;;  %s209_s12 = int_to_ptr.vmem [resolvable:$true] %s208_s12 }
  0x28   :  { %v50_v6 = vld [vmem:[#allocation5 + $0x38] sm:$0xff]  ;;  %v221_v7 = vpack.c.bf16 %v45_v4, %v43_v2  ;;  %v47_v9 = vld [vmem:[#allocation5 + $0x20] sm:$0xff]  ;;  %v49_v10 = vld [vmem:[#allocation5 + $0x30] sm:$0xff]  ;;  %p343_p3 = scmp.lt.s32.totalorder %s209_s12, %s209_s12 }
  0x29   :  { %v223_v8 = vpack.c.bf16 %v50_v6, %v48_v5  ;;  %v52_v11 = vld [vmem:[#allocation5 + $0x48] sm:$0xff]  ;;  %220 = vmatprep.subr.bf16.mxu0 %v219_v3  ;;  %v54_v12 = vld [vmem:[#allocation5 + $0x58] sm:$0xff]  ;;  %v225_v13 = vpack.c.bf16 %v49_v10, %v47_v9  ;;  %v51_v15 = vld [vmem:[#allocation5 + $0x40] sm:$0xff] }
  0x2a   :  { %222 = vmatpush1.bf16.msra.mxu0 %v221_v7  ;;  %v227_v14 = vpack.c.bf16 %v54_v12, %v52_v11  ;;  %v53_v16 = vld [vmem:[#allocation5 + $0x50] sm:$0xff]  ;;  %v56_v17 = vld [vmem:[#allocation5 + $0x68] sm:$0xff]  ;;  %v58_v18 = vld [vmem:[#allocation5 + $0x78] sm:$0xff] }
  0x2b   :  { %224 = vmatprep.subr.bf16.mxu0 %v223_v8  ;;  %v229_v19 = vpack.c.bf16 %v53_v16, %v51_v15  ;;  %v231_v20 = vpack.c.bf16 %v58_v18, %v56_v17  ;;  %v55_v21 = vld [vmem:[#allocation5 + $0x60] sm:$0xff]  ;;  %v57_v22 = vld [vmem:[#allocation5 + $0x70] sm:$0xff]  ;;  %v60_v23 = vld [vmem:[#allocation5 + $0x88] sm:$0xff] }
  0x2c   :  { %v62_v24 = vld [vmem:[#allocation5 + $0x98] sm:$0xff]  ;;  %v233_v25 = vpack.c.bf16 %v57_v22, %v55_v21  ;;  %v59_v27 = vld [vmem:[#allocation5 + $0x80] sm:$0xff]  ;;  %v61_v28 = vld [vmem:[#allocation5 + $0x90] sm:$0xff] }
  0x2d   :  { %v235_v26 = vpack.c.bf16 %v62_v24, %v60_v23  ;;  %v64_v29 = vld [vmem:[#allocation5 + $0xa8] sm:$0xff]  ;;  %v66_v30 = vld [vmem:[#allocation5 + $0xb8] sm:$0xff]  ;;  %v237_v31 = vpack.c.bf16 %v61_v28, %v59_v27  ;;  %v63_v33 = vld [vmem:[#allocation5 + $0xa0] sm:$0xff] }
  0x2e   :  { %226 = vmatpush1.bf16.msra.mxu0 %v225_v13  ;;  %v239_v32 = vpack.c.bf16 %v66_v30, %v64_v29  ;;  %v65_v34 = vld [vmem:[#allocation5 + $0xb0] sm:$0xff]  ;;  %v68_v35 = vld [vmem:[#allocation5 + $0xc8] sm:$0xff]  ;;  %v70_v36 = vld [vmem:[#allocation5 + $0xd8] sm:$0xff] }
  0x2f   :  { %228 = vmatprep.subr.bf16.mxu0 %v227_v14  ;;  %v241_v37 = vpack.c.bf16 %v65_v34, %v63_v33  ;;  %v243_v38 = vpack.c.bf16 %v70_v36, %v68_v35  ;;  %v67_v39 = vld [vmem:[#allocation5 + $0xc0] sm:$0xff]  ;;  %v69_v40 = vld [vmem:[#allocation5 + $0xd0] sm:$0xff]  ;;  %v42_v41 = vld [vmem:[#allocation2 + $0x8] sm:$0xff]  ;;  %v109_v34 = vlaneseq }
  0x30   :  { %v72_v42 = vld [vmem:[#allocation5 + $0xe8] sm:$0xff]  ;;  %v74_v43 = vld [vmem:[#allocation5 + $0xf8] sm:$0xff]  ;;  %183 = vmatprep.mubr.f32.mxu0 %v42_v41  ;;  %v245_v44 = vpack.c.bf16 %v69_v40, %v67_v39  ;;  %v71_v46 = vld [vmem:[#allocation5 + $0xe0] sm:$0xff] }
  0x31   :  { %v247_v45 = vpack.c.bf16 %v74_v43, %v72_v42  ;;  %v73_v47 = vld [vmem:[#allocation5 + $0xf0] sm:$0xff]  ;;  %v76_v48 = vld [vmem:[#allocation5 + $0x108] sm:$0xff]  ;;  %v78_v49 = vld [vmem:[#allocation5 + $0x118] sm:$0xff]  ;;  %v110_v35 = vshrl.u32 %v109_v34, 7 }
  0x32   :  { %230 = vmatpush1.bf16.msra.mxu0 %v229_v19  ;;  %v249_v50 = vpack.c.bf16 %v73_v47, %v71_v46  ;;  %v251_v51 = vpack.c.bf16 %v78_v49, %v76_v48  ;;  %v75_v52 = vld [vmem:[#allocation5 + $0x100] sm:$0xff]  ;;  %v77_v53 = vld [vmem:[#allocation5 + $0x110] sm:$0xff]  ;;  %v80_v54 = vld [vmem:[#allocation5 + $0x128] sm:$0xff] }
  0x33   :  { %232 = vmatprep.subr.bf16.mxu0 %v231_v20  ;;  %v82_v55 = vld [vmem:[#allocation5 + $0x138] sm:$0xff]  ;;  %v253_v56 = vpack.c.bf16 %v77_v53, %v75_v52  ;;  %v79_v58 = vld [vmem:[#allocation5 + $0x120] sm:$0xff]  ;;  %v81_v59 = vld [vmem:[#allocation5 + $0x130] sm:$0xff]  ;;  %v111_v36 = vsub.s32 0, %v110_v35  ;;  %v115_v42 = vsub.s32 1, %v110_v35 }
  0x34   :  { %v255_v57 = vpack.c.bf16 %v82_v55, %v80_v54  ;;  %v84_v60 = vld [vmem:[#allocation5 + $0x148] sm:$0xff]  ;;  %v86_v61 = vld [vmem:[#allocation5 + $0x158] sm:$0xff]  ;;  %v257_v62 = vpack.c.bf16 %v81_v59, %v79_v58  ;;  %v83_v0 = vld [vmem:[#allocation5 + $0x140] sm:$0xff] }
  0x35   :  { %v259_v63 = vpack.c.bf16 %v86_v61, %v84_v60  ;;  %v85_v1 = vld [vmem:[#allocation5 + $0x150] sm:$0xff]  ;;  %v88_v2 = vld [vmem:[#allocation5 + $0x168] sm:$0xff]  ;;  %v90_v3 = vld [vmem:[#allocation5 + $0x178] sm:$0xff] }
  0x36   :  { %234 = vmatpush1.bf16.msra.mxu0 %v233_v25  ;;  %v261_v4 = vpack.c.bf16 %v85_v1, %v83_v0  ;;  %v263_v5 = vpack.c.bf16 %v90_v3, %v88_v2  ;;  %v87_v6 = vld [vmem:[#allocation5 + $0x160] sm:$0xff]  ;;  %v89_v7 = vld [vmem:[#allocation5 + $0x170] sm:$0xff]  ;;  %v92_v8 = vld [vmem:[#allocation5 + $0x188] sm:$0xff] }
  0x37   :  { %236 = vmatprep.subr.bf16.mxu0 %v235_v26  ;;  %v94_v9 = vld [vmem:[#allocation5 + $0x198] sm:$0xff]  ;;  %v265_v10 = vpack.c.bf16 %v89_v7, %v87_v6  ;;  %v91_v12 = vld [vmem:[#allocation5 + $0x180] sm:$0xff]  ;;  %v93_v13 = vld [vmem:[#allocation5 + $0x190] sm:$0xff] }
  0x38   :  { %v267_v11 = vpack.c.bf16 %v94_v9, %v92_v8  ;;  %v96_v14 = vld [vmem:[#allocation5 + $0x1a8] sm:$0xff]  ;;  %v98_v15 = vld [vmem:[#allocation5 + $0x1b8] sm:$0xff]  ;;  %v269_v16 = vpack.c.bf16 %v93_v13, %v91_v12  ;;  %v95_v18 = vld [vmem:[#allocation5 + $0x1a0] sm:$0xff] }
  0x39   :  { %v271_v17 = vpack.c.bf16 %v98_v15, %v96_v14  ;;  %v97_v19 = vld [vmem:[#allocation5 + $0x1b0] sm:$0xff]  ;;  %v100_v20 = vld [vmem:[#allocation5 + $0x1c8] sm:$0xff]  ;;  %v102_v21 = vld [vmem:[#allocation5 + $0x1d8] sm:$0xff] }
  0x3a   :  { %238 = vmatpush1.bf16.msra.mxu0 %v237_v31  ;;  %v273_v22 = vpack.c.bf16 %v97_v19, %v95_v18  ;;  %v275_v23 = vpack.c.bf16 %v102_v21, %v100_v20  ;;  %v99_v24 = vld [vmem:[#allocation5 + $0x1c0] sm:$0xff]  ;;  %v101_v25 = vld [vmem:[#allocation5 + $0x1d0] sm:$0xff]  ;;  %v104_v26 = vld [vmem:[#allocation5 + $0x1e8] sm:$0xff] }
  0x3b   :  { %240 = vmatprep.subr.bf16.mxu0 %v239_v32  ;;  %v106_v27 = vld [vmem:[#allocation5 + $0x1f8] sm:$0xff]  ;;  %v277_v28 = vpack.c.bf16 %v101_v25, %v99_v24  ;;  %v103_v30 = vld [vmem:[#allocation5 + $0x1e0] sm:$0xff]  ;;  %v105_v31 = vld [vmem:[#allocation5 + $0x1f0] sm:$0xff] }
  0x3c   :  { %v279_v29 = vpack.c.bf16 %v106_v27, %v104_v26  ;;  %v281_v32 = vpack.c.bf16 %v105_v31, %v103_v30  ;;  %v41_v33 = vld [vmem:[#allocation2] sm:$0xff] }
  0x3e   :  { %242 = vmatpush1.bf16.msra.mxu0 %v241_v37  ;;  %v107_v37 = vld [vmem:[%s439_s2] sm:$0x3]  ;;  %s338_s2 = scalar_lea.vmem %s209_s12, 128 }
  0x3f   :  { %244 = vmatprep.subr.bf16.mxu0 %v243_v38  ;;  %v112_v38 = vrot.slane %v107_v37, %v111_v36  ;;  %p339_p2 = scmp.ne.s32.totalorder %s209_s12, %s338_s2  ;;  %p344_p4 = scmp.lt.s32.totalorder %s338_s2, %s338_s2 }
  0x41   :  { %p345_p5 = por %p344_p4, %p343_p3 }
  0x42   :  { %246 = vmatpush1.bf16.msra.mxu0 %v245_v44  ;;  %v116_v44 = vrot.slane %v107_v37, %v115_v42 }
  0x43   :  { %248 = vmatprep.subr.bf16.mxu0 %v247_v45  ;;  %p346_p6 = pnand %p345_p5, %p339_p2 }
  0x46   :  { %250 = vmatpush1.bf16.msra.mxu0 %v249_v50 }
  0x47   :  { %252 = vmatprep.subr.bf16.mxu0 %v251_v51 }
  0x4a   :  { %254 = vmatpush1.bf16.msra.mxu0 %v253_v56 }
  0x4b   :  { %256 = vmatprep.subr.bf16.mxu0 %v255_v57 }
  0x4e   :  { %258 = vmatpush1.bf16.msra.mxu0 %v257_v62 }
  0x4f   :  { %260 = vmatprep.subr.bf16.mxu0 %v259_v63 }
  0x52   :  { %262 = vmatpush1.bf16.msra.mxu0 %v261_v4 }
  0x53   :  { %264 = vmatprep.subr.bf16.mxu0 %v263_v5 }
  0x56   :  { %266 = vmatpush1.bf16.msra.mxu0 %v265_v10 }
  0x57   :  { %268 = vmatprep.subr.bf16.mxu0 %v267_v11 }
  0x5a   :  { %270 = vmatpush1.bf16.msra.mxu0 %v269_v16 }
  0x5b   :  { %272 = vmatprep.subr.bf16.mxu0 %v271_v17 }
  0x5e   :  { %274 = vmatpush1.bf16.msra.mxu0 %v273_v22 }
  0x5f   :  { %276 = vmatprep.subr.bf16.mxu0 %v275_v23 }
  0x62   :  { %278 = vmatpush1.bf16.msra.mxu0 %v277_v28 }
  0x63   :  { %280 = vmatprep.subr.bf16.mxu0 %v279_v29 }
  0x66   :  { %282 = vmatpush1.bf16.msra.mxu0 %v281_v32 }
  0x69   :  { %184 = vmatmul.mubr.f32.vlgmr.msra.gmra.mrb[0].mxu0 %v41_v33 }
 0x13c   :  { %v185_v39 = vpop.f32.mrb[0].mxu0 }
 0x13d   :  { %v186_v40 = vadd.f32 %v185_v39, %v112_v38  ;;  %v187_v41 = vpop.f32.mrb[1].mxu0 }
 0x13e   :  { %v188_v45 = vadd.f32 %v187_v41, %v116_v44 }
 0x13f   :  { %v218_v43 = vmul.f32 -1.442695, %v186_v40 }
 0x141   :  { %288 = vpow2.f32 %v218_v43 }
 0x142   :  { %290 = vtanh.f32 %v188_v45 }
 0x14b   :  { %v289_v46 = vpop.eup %288 }
 0x14c   :  { %v193_v47 = vadd.f32 1.0, %v289_v46  ;;  %v291_v48 = vpop.eup %290 }
 0x14d   :  { %v198_v49 = vsub.f32 %v41_v33, %v291_v48 }
 0x14e   :  { %292 = vrcp.f32 %v193_v47 }
 0x158   :  { %v293_v50 = vpop.eup %292 }
 0x159   :  { %v199_v51 = vmul.f32 %v293_v50, %v198_v49 }
 0x15b   :  { %v200_v52 = vadd.f32 %v291_v48, %v199_v51 }
 0x15d   :  { %201 = vst [vmem:[#allocation7] sm:$0xff] %v200_v52 }
 0x15e   :  { %349 = shalt.err (!%p346_p6)
}
 0x15f   :  { %s350_s15 = scalar_lea.hbm %s440_s3, 128 }
 0x160   :  { %p351_p7 = scmp.ne.s32.totalorder %s440_s3, %s350_s15  ;;  %p354_p8 = scmp.lt.u32.totalorder %s350_s15, %s440_s3 }
 0x162   :  { %p356_p9 = pnand %p354_p8, %p351_p7 }
 0x164   :  { %359 = shalt.err (!%p356_p9)
}
 0x165   :  { %211 = dma.vmem_to_hbm [thread:$0]  %s209_s12, 128, %s440_s3, [#allocation4]  }
 0x166   :  { %364 = dma.done.wait [#allocation4], 128  }
 0x167   :  { %365 = vsyncadd [#allocation4], 4294967168 }
 0x168   :  { %215 = vsyncpa [#allocation3], 1 }
 0x169   :  { %216 = vsyncpa [#allocation6], 1 }
 0x16a   :  { %217 = vsyncpa [#allocation4], 1 }

</bundles_post_ra>
